<compile_context>
chip_gen: v7x
topology: tpu7x:2x2x1
jax: 0.10.0
libtpu: 0.0.40
codegen_flags: <defaults>
</compile_context>

<pallas_src>
import functools

import jax
import jax.numpy as jnp
from jax.experimental import pallas as pl
from jax.experimental.pallas import tpu as pltpu


def _round_up(x, m):
    return ((x + m - 1) // m) * m


def _emitter_kernel(z_ref, wf_ref, bf_ref, ws_ref, bs_ref, out_ref, *, obs_pad):
    # mu = z @ W_fused + b_fused   (single MXU matmul: the 3 stacked linears
    #                               in forward() have no nonlinearity between
    #                               them, so they fold into one affine map)
    z = z_ref[...]
    mu = jnp.dot(z, wf_ref[...], preferred_element_type=jnp.float32) + bf_ref[...]

    # sigma = softplus(relu(mu) @ W_sig + b_sig)
    s = jnp.dot(jnp.maximum(mu, 0.0), ws_ref[...],
                preferred_element_type=jnp.float32) + bs_ref[...]
    # numerically stable softplus: max(x, 0) + log1p(exp(-|x|))
    sigma = jnp.maximum(s, 0.0) + jnp.log1p(jnp.exp(-jnp.abs(s)))

    # Lane-dense output slab [mu | sigma]; both slice writes are 128-aligned.
    out_ref[:, :obs_pad] = mu.astype(out_ref.dtype)
    out_ref[:, obs_pad:] = sigma.astype(out_ref.dtype)


def gaussian_emitter_forward(z_t, params, *, row_tile=128):
    """Fused GaussianEmitter forward.

    z_t:    [M, latent_dim] f32 — M may be batch or flattened time*batch.
    params: weights stored as (in, out), biases as (1, out) (equivalent to
            PyTorch's x @ W.T + b with W of shape (out, in)).
    Returns (mu, sigma), each [M, obs_dim].
    """
    M, latent_dim = z_t.shape
    obs_dim = params["w_mu"].shape[1]

    # ---- 1. Fold the three back-to-back linears into one affine map
    #         (done outside the kernel: jit-constant-foldable / amortized).
    w_fused = (params["w_h1"] @ params["w_h2"]) @ params["w_mu"]          # (lat, obs)
    b_fused = (params["b_h1"] @ params["w_h2"] + params["b_h2"]) @ params["w_mu"] \
              + params["b_mu"]                                            # (1, obs)

    # ---- 2. Zero-pad feature dims to 128 lanes (lane-full MXU, unmasked stores).
    lat_p = _round_up(latent_dim, 128)
    obs_p = _round_up(obs_dim, 128)
    wf = jnp.zeros((lat_p, obs_p), jnp.float32).at[:latent_dim, :obs_dim].set(w_fused)
    bf = jnp.zeros((1, obs_p), jnp.float32).at[:, :obs_dim].set(b_fused)
    ws = jnp.zeros((obs_p, obs_p), jnp.float32).at[:obs_dim, :obs_dim].set(params["w_sig"])
    bs = jnp.zeros((1, obs_p), jnp.float32).at[:, :obs_dim].set(params["b_sig"])

    # ---- 3. Row tiling: weights stay VMEM-resident (constant index_map),
    #         z / output tiles stream over a 1-D "parallel" grid.
    tm = min(row_tile, _round_up(M, 8))
    m_p = _round_up(M, tm)
    z = jnp.zeros((m_p, lat_p), jnp.float32).at[:M, :latent_dim].set(z_t)

    kernel = functools.partial(_emitter_kernel, obs_pad=obs_p)

    out = pl.pallas_call(
        kernel,
        out_shape=jax.ShapeDtypeStruct((m_p, 2 * obs_p), jnp.float32),
        grid=(m_p // tm,),
        in_specs=[
            pl.BlockSpec((tm, lat_p), lambda i: (i, 0)),       # z: streams per tile
            pl.BlockSpec((lat_p, obs_p), lambda i: (0, 0)),    # W_fused: resident
            pl.BlockSpec((1, obs_p), lambda i: (0, 0)),        # b_fused: resident
            pl.BlockSpec((obs_p, obs_p), lambda i: (0, 0)),    # W_sig:   resident
            pl.BlockSpec((1, obs_p), lambda i: (0, 0)),        # b_sig:   resident
        ],
        out_specs=pl.BlockSpec((tm, 2 * obs_p), lambda i: (i, 0)),
        compiler_params=pltpu.CompilerParams(
            dimension_semantics=("parallel",),
        ),
    )(z, wf, bf, ws, bs)

    mu = out[:M, :obs_dim]
    sigma = out[:M, obs_p:obs_p + obs_dim]
    return mu, sigma


def init_params(key, obs_dim, latent_dim, emission_dim):
    """Deterministic synthetic parameters for the layers used in forward()."""
    ks = jax.random.split(key, 8)

    def lin(kw, kb, fan_in, fan_out):
        w = 0.1 * jax.random.normal(kw, (fan_in, fan_out), jnp.float32)
        b = 0.1 * jax.random.normal(kb, (1, fan_out), jnp.float32)
        return w, b

    w_h1, b_h1 = lin(ks[0], ks[1], latent_dim, emission_dim)
    w_h2, b_h2 = lin(ks[2], ks[3], emission_dim, emission_dim)
    w_mu, b_mu = lin(ks[4], ks[5], emission_dim, obs_dim)
    w_sig, b_sig = lin(ks[6], ks[7], obs_dim, obs_dim)
    return dict(w_h1=w_h1, b_h1=b_h1, w_h2=w_h2, b_h2=b_h2,
                w_mu=w_mu, b_mu=b_mu, w_sig=w_sig, b_sig=b_sig)


def _reference_forward(z_t, p):
    """Unfused pure-JAX reference mirroring the PyTorch forward exactly."""
    h1 = z_t @ p["w_h1"] + p["b_h1"]
    h2 = h1 @ p["w_h2"] + p["b_h2"]
    mu = h2 @ p["w_mu"] + p["b_mu"]
    s = jnp.maximum(mu, 0.0) @ p["w_sig"] + p["b_sig"]
    sigma = jnp.maximum(s, 0.0) + jnp.log1p(jnp.exp(-jnp.abs(s)))
    return mu, sigma


if __name__ == "__main__":
    obs_dim, latent_dim, emission_dim = 32, 32, 64
    batch = 8

    key = jax.random.PRNGKey(0)
    k_z, k_p = jax.random.split(key)
    z_t = jax.random.normal(k_z, (batch, latent_dim), jnp.float32)
    params = init_params(k_p, obs_dim, latent_dim, emission_dim)

    mu, sigma = jax.jit(gaussian_emitter_forward)(z_t, params)
    mu = jax.block_until_ready(mu)
    sigma = jax.block_until_ready(sigma)

    mu_ref, sigma_ref = _reference_forward(z_t, params)
    assert mu.shape == (batch, obs_dim) and sigma.shape == (batch, obs_dim)
    assert jnp.allclose(mu, mu_ref, atol=1e-4, rtol=1e-4)
    assert jnp.allclose(sigma, sigma_ref, atol=1e-4, rtol=1e-4)
    assert bool(jnp.all(sigma > 0))

    print("KERNEL_OK")
</pallas_src>

<mosaic_0001>
module attributes {stable_mosaic.version = 11 : i64} {
  func.func @_emitter_kernel(%arg0: i32, %arg1: memref<8x128xf32, #tpu.memory_space<vmem>>, %arg2: memref<128x128xf32, #tpu.memory_space<vmem>>, %arg3: memref<1x128xf32, #tpu.memory_space<vmem>>, %arg4: memref<128x128xf32, #tpu.memory_space<vmem>>, %arg5: memref<1x128xf32, #tpu.memory_space<vmem>>, %arg6: memref<8x256xf32, #tpu.memory_space<vmem>>) attributes {dimension_semantics = [#tpu.dimension_semantics<parallel>], iteration_bounds = array<i64: 1>, scalar_prefetch = 0 : i64, scratch_operands = 0 : i64, tpu.core_type = #tpu.core_type<tc>, window_params = [{transform_indices = @transform_0, window_bounds = array<i64: 8, 128>}, {pipeline_mode = #tpu.pipeline_mode<synchronous>, transform_indices = @transform_1, window_bounds = array<i64: 128, 128>}, {pipeline_mode = #tpu.pipeline_mode<synchronous>, transform_indices = @transform_2, window_bounds = array<i64: 1, 128>}, {pipeline_mode = #tpu.pipeline_mode<synchronous>, transform_indices = @transform_3, window_bounds = array<i64: 128, 128>}, {pipeline_mode = #tpu.pipeline_mode<synchronous>, transform_indices = @transform_4, window_bounds = array<i64: 1, 128>}, {transform_indices = @transform_5, window_bounds = array<i64: 8, 256>}]} {
    %c0 = arith.constant 0 : index
    %c0_0 = arith.constant 0 : index
    %0 = vector.load %arg1[%c0, %c0_0] : memref<8x128xf32, #tpu.memory_space<vmem>>, vector<8x128xf32>
    %c0_1 = arith.constant 0 : index
    %c0_2 = arith.constant 0 : index
    %1 = vector.load %arg2[%c0_1, %c0_2] : memref<128x128xf32, #tpu.memory_space<vmem>>, vector<128x128xf32>
    %cst = arith.constant dense<0.000000e+00> : vector<8x128xf32>
    %2 = tpu.matmul %0, %1, %cst {dimension_numbers = #tpu.dot_dimension_numbers<[1], [0], [0], [1], [0, 0, 1, 1], [], []>} : vector<8x128xf32>, vector<128x128xf32>, vector<8x128xf32> -> vector<8x128xf32>
    %c0_3 = arith.constant 0 : index
    %c0_4 = arith.constant 0 : index
    %3 = vector.load %arg3[%c0_3, %c0_4] : memref<1x128xf32, #tpu.memory_space<vmem>>, vector<1x128xf32>
    %4 = vector.broadcast %3 : vector<1x128xf32> to vector<8x128xf32>
    %5 = arith.addf %2, %4 : vector<8x128xf32>
    %cst_5 = arith.constant 0.000000e+00 : f32
    %6 = vector.broadcast %cst_5 : f32 to vector<8x128xf32>
    %7 = arith.maximumf %5, %6 : vector<8x128xf32>
    %c0_6 = arith.constant 0 : index
    %c0_7 = arith.constant 0 : index
    %8 = vector.load %arg4[%c0_6, %c0_7] : memref<128x128xf32, #tpu.memory_space<vmem>>, vector<128x128xf32>
    %cst_8 = arith.constant dense<0.000000e+00> : vector<8x128xf32>
    %9 = tpu.matmul %7, %8, %cst_8 {dimension_numbers = #tpu.dot_dimension_numbers<[1], [0], [0], [1], [0, 0, 1, 1], [], []>} : vector<8x128xf32>, vector<128x128xf32>, vector<8x128xf32> -> vector<8x128xf32>
    %c0_9 = arith.constant 0 : index
    %c0_10 = arith.constant 0 : index
    %10 = vector.load %arg5[%c0_9, %c0_10] : memref<1x128xf32, #tpu.memory_space<vmem>>, vector<1x128xf32>
    %11 = vector.broadcast %10 : vector<1x128xf32> to vector<8x128xf32>
    %12 = arith.addf %9, %11 : vector<8x128xf32>
    %cst_11 = arith.constant 0.000000e+00 : f32
    %13 = vector.broadcast %cst_11 : f32 to vector<8x128xf32>
    %14 = arith.maximumf %12, %13 : vector<8x128xf32>
    %15 = math.absf %12 : vector<8x128xf32>
    %cst_12 = arith.constant 0.000000e+00 : f32
    %16 = vector.broadcast %cst_12 : f32 to vector<8x128xf32>
    %17 = arith.subf %16, %15 : vector<8x128xf32>
    %18 = math.exp %17 : vector<8x128xf32>
    %19 = math.log1p %18 : vector<8x128xf32>
    %20 = arith.addf %14, %19 : vector<8x128xf32>
    %c0_13 = arith.constant 0 : index
    %c0_14 = arith.constant 0 : index
    %21 = vector.load %arg6[%c0_13, %c0_14] : memref<8x256xf32, #tpu.memory_space<vmem>>, vector<8x128xf32>
    tpu.vector_store %arg6[%c0_13, %c0_14], %5 {strides = array<i32>} : memref<8x256xf32, #tpu.memory_space<vmem>>, vector<8x128xf32>,
    %c0_15 = arith.constant 0 : index
    %c128 = arith.constant 128 : index
    %22 = vector.load %arg6[%c0_15, %c128] : memref<8x256xf32, #tpu.memory_space<vmem>>, vector<8x128xf32>
    tpu.vector_store %arg6[%c0_15, %c128], %20 {strides = array<i32>} : memref<8x256xf32, #tpu.memory_space<vmem>>, vector<8x128xf32>,
    return
  }
  func.func @transform_0(%arg0: i32) -> (i32, i32) {
    %c0_i32 = arith.constant 0 : i32
    %c0_i32_0 = arith.constant 0 : i32
    return %arg0, %c0_i32 : i32, i32
  }
  func.func @transform_1(%arg0: i32) -> (i32, i32) {
    %c0_i32 = arith.constant 0 : i32
    %c0_i32_0 = arith.constant 0 : i32
    %c0_i32_1 = arith.constant 0 : i32
    return %c0_i32, %c0_i32_0 : i32, i32
  }
  func.func @transform_2(%arg0: i32) -> (i32, i32) {
    %c0_i32 = arith.constant 0 : i32
    %c0_i32_0 = arith.constant 0 : i32
    %c0_i32_1 = arith.constant 0 : i32
    return %c0_i32, %c0_i32_0 : i32, i32
  }
  func.func @transform_3(%arg0: i32) -> (i32, i32) {
    %c0_i32 = arith.constant 0 : i32
    %c0_i32_0 = arith.constant 0 : i32
    %c0_i32_1 = arith.constant 0 : i32
    return %c0_i32, %c0_i32_0 : i32, i32
  }
  func.func @transform_4(%arg0: i32) -> (i32, i32) {
    %c0_i32 = arith.constant 0 : i32
    %c0_i32_0 = arith.constant 0 : i32
    %c0_i32_1 = arith.constant 0 : i32
    return %c0_i32, %c0_i32_0 : i32, i32
  }
  func.func @transform_5(%arg0: i32) -> (i32, i32) {
    %c0_i32 = arith.constant 0 : i32
    %c0_i32_0 = arith.constant 0 : i32
    return %arg0, %c0_i32 : i32, i32
  }
}

</mosaic_0001>

<bundles_post_ra>
// kernel: gaussian_emitter_forward.1
= control target key start
LH: loop header
LB: loop body
LE: loop exit
PB: predicated region body
PF: predicated region fallthrough
CT: control target
= control target key end

     0   :  { %v390_v0 = vmov 0.0|0.0   ;;  %vm391_vm0 = vmmov 0   ;;  %v392_v4 = vmov 0.0   ;;  %s550_s1 = inlined_call_operand.vmem [shape: f32[128,128], index: 1, kind: input, shape index: {}]   ;;  %s551_s3 = inlined_call_operand.vmem [shape: f32[128,128], index: 3, kind: input, shape index: {}]   ;;  %s552_s0 = inlined_call_operand.vmem [shape: f32[8,128], index: 0, kind: input, shape index: {}]   ;;  %s553_s2 = inlined_call_operand.vmem [shape: f32[1,128], index: 2, kind: input, shape index: {}]   ;;  %s554_s5 = inlined_call_operand.vmem [shape: f32[8,256], index: 5, kind: output, shape index: {}]   ;;  %s555_s4 = inlined_call_operand.vmem [shape: f32[1,128], index: 4, kind: input, shape index: {}]  }
   0x1   :  { %335 = vmatprep.subr.bf16.mxu0 %v390_v0  ;;  %v21_v1 = vld [vmem:[%s550_s1] sm:$0xff]  ;;  %v22_v2 = vld [vmem:[%s550_s1 + $0x8] sm:$0xff]  ;;  %v23_v3 = vld [vmem:[%s550_s1 + $0x10] sm:$0xff]  ;;  %297 = vmatprep.mubr.msk.f32.mxu0 %vm391_vm0, %v392_v4 }
   0x2   :  { %v336_v5 = vpack.c.bf16 %v22_v2, %v21_v1  ;;  %v24_v6 = vld [vmem:[%s550_s1 + $0x18] sm:$0xff]  ;;  %359 = vmatprep.subr.bf16.mxu1 %v390_v0  ;;  %332 = vmatprep.mubr.msk.f32.mxu1 %vm391_vm0, %v392_v4  ;;  %v25_v8 = vld [vmem:[%s550_s1 + $0x20] sm:$0xff]  ;;  %v26_v9 = vld [vmem:[%s550_s1 + $0x28] sm:$0xff] }
   0x3   :  { %v339_v7 = vpack.c.bf16 %v24_v6, %v23_v3  ;;  %v115_v10 = vld [vmem:[%s551_s3] sm:$0xff]  ;;  %v116_v11 = vld [vmem:[%s551_s3 + $0x8] sm:$0xff]  ;;  %v117_v12 = vld [vmem:[%s551_s3 + $0x10] sm:$0xff]  ;;  %v342_v14 = vpack.c.bf16 %v26_v9, %v25_v8 }
   0x4   :  { %337 = vmatpush3.bf16.msra.mxu0 %v336_v5  ;;  %v118_v13 = vld [vmem:[%s551_s3 + $0x18] sm:$0xff]  ;;  %v360_v15 = vpack.c.bf16 %v116_v11, %v115_v10  ;;  %v27_v16 = vld [vmem:[%s550_s1 + $0x30] sm:$0xff]  ;;  %v119_v19 = vld [vmem:[%s551_s3 + $0x20] sm:$0xff] }
   0x5   :  { %338 = vmatprep.subr.bf16.mxu0 %v390_v0  ;;  %v28_v17 = vld [vmem:[%s550_s1 + $0x38] sm:$0xff]  ;;  %v363_v18 = vpack.c.bf16 %v118_v13, %v117_v12  ;;  %v120_v20 = vld [vmem:[%s551_s3 + $0x28] sm:$0xff]  ;;  %v29_v22 = vld [vmem:[%s550_s1 + $0x40] sm:$0xff] }
   0x6   :  { %361 = vmatpush3.bf16.msra.mxu1 %v360_v15  ;;  %v345_v21 = vpack.c.bf16 %v28_v17, %v27_v16  ;;  %v30_v23 = vld [vmem:[%s550_s1 + $0x48] sm:$0xff]  ;;  %v366_v24 = vpack.c.bf16 %v120_v20, %v119_v19  ;;  %v121_v25 = vld [vmem:[%s551_s3 + $0x30] sm:$0xff]  ;;  %v122_v26 = vld [vmem:[%s551_s3 + $0x38] sm:$0xff] }
   0x7   :  { %362 = vmatprep.subr.bf16.mxu1 %v390_v0  ;;  %v348_v27 = vpack.c.bf16 %v30_v23, %v29_v22  ;;  %v31_v28 = vld [vmem:[%s550_s1 + $0x50] sm:$0xff]  ;;  %v32_v29 = vld [vmem:[%s550_s1 + $0x58] sm:$0xff]  ;;  %v369_v30 = vpack.c.bf16 %v122_v26, %v121_v25  ;;  %v123_v31 = vld [vmem:[%s551_s3 + $0x40] sm:$0xff] }
   0x8   :  { %340 = vmatpush3.bf16.msra.mxu0 %v339_v7  ;;  %v124_v32 = vld [vmem:[%s551_s3 + $0x48] sm:$0xff]  ;;  %v351_v33 = vpack.c.bf16 %v32_v29, %v31_v28  ;;  %v33_v34 = vld [vmem:[%s550_s1 + $0x60] sm:$0xff]  ;;  %v125_v37 = vld [vmem:[%s551_s3 + $0x50] sm:$0xff] }
   0x9   :  { %341 = vmatprep.subr.bf16.mxu0 %v390_v0  ;;  %v34_v35 = vld [vmem:[%s550_s1 + $0x68] sm:$0xff]  ;;  %v372_v36 = vpack.c.bf16 %v124_v32, %v123_v31  ;;  %v126_v38 = vld [vmem:[%s551_s3 + $0x58] sm:$0xff]  ;;  %v35_v40 = vld [vmem:[%s550_s1 + $0x70] sm:$0xff] }
   0xa   :  { %364 = vmatpush3.bf16.msra.mxu1 %v363_v18  ;;  %v354_v39 = vpack.c.bf16 %v34_v35, %v33_v34  ;;  %v36_v41 = vld [vmem:[%s550_s1 + $0x78] sm:$0xff]  ;;  %v375_v42 = vpack.c.bf16 %v126_v38, %v125_v37  ;;  %v127_v43 = vld [vmem:[%s551_s3 + $0x60] sm:$0xff]  ;;  %v128_v44 = vld [vmem:[%s551_s3 + $0x68] sm:$0xff] }
   0xb   :  { %365 = vmatprep.subr.bf16.mxu1 %v390_v0  ;;  %v357_v45 = vpack.c.bf16 %v36_v41, %v35_v40  ;;  %v378_v46 = vpack.c.bf16 %v128_v44, %v127_v43  ;;  %v20_v47 = vld [vmem:[%s552_s0] sm:$0xff]  ;;  %v129_v48 = vld [vmem:[%s551_s3 + $0x70] sm:$0xff]  ;;  %v130_v49 = vld [vmem:[%s551_s3 + $0x78] sm:$0xff] }
   0xc   :  { %343 = vmatpush3.bf16.msra.mxu0 %v342_v14  ;;  %v381_v50 = vpack.c.bf16 %v130_v49, %v129_v48  ;;  %v229_v51 = vld [vmem:[%s553_s2] ss:$0 sm:$0xff] }
   0xd   :  { %344 = vmatprep.subr.bf16.mxu0 %v390_v0  ;;  %v230_v56 = vld [vmem:[%s555_s4] ss:$0 sm:$0xff] }
   0xe   :  { %367 = vmatpush3.bf16.msra.mxu1 %v366_v24 }
   0xf   :  { %368 = vmatprep.subr.bf16.mxu1 %v390_v0 }
  0x10   :  { %346 = vmatpush3.bf16.msra.mxu0 %v345_v21 }
  0x11   :  { %347 = vmatprep.subr.bf16.mxu0 %v390_v0 }
  0x12   :  { %370 = vmatpush3.bf16.msra.mxu1 %v369_v30 }
  0x13   :  { %371 = vmatprep.subr.bf16.mxu1 %v390_v0 }
  0x14   :  { %349 = vmatpush3.bf16.msra.mxu0 %v348_v27 }
  0x15   :  { %350 = vmatprep.subr.bf16.mxu0 %v390_v0 }
  0x16   :  { %373 = vmatpush3.bf16.msra.mxu1 %v372_v36 }
  0x17   :  { %374 = vmatprep.subr.bf16.mxu1 %v390_v0 }
  0x18   :  { %352 = vmatpush3.bf16.msra.mxu0 %v351_v33 }
  0x19   :  { %353 = vmatprep.subr.bf16.mxu0 %v390_v0 }
  0x1a   :  { %376 = vmatpush3.bf16.msra.mxu1 %v375_v42 }
  0x1b   :  { %377 = vmatprep.subr.bf16.mxu1 %v390_v0 }
  0x1c   :  { %355 = vmatpush3.bf16.msra.mxu0 %v354_v39 }
  0x1d   :  { %356 = vmatprep.subr.bf16.mxu0 %v390_v0 }
  0x1e   :  { %379 = vmatpush3.bf16.msra.mxu1 %v378_v46 }
  0x1f   :  { %380 = vmatprep.subr.bf16.mxu1 %v390_v0 }
  0x20   :  { %358 = vmatpush3.bf16.msra.mxu0 %v357_v45 }
  0x22   :  { %382 = vmatpush3.bf16.msra.mxu1 %v381_v50 }
  0x23   :  { %298 = vmatmul.mubr.f32.vlgmr.msra.gmra.mrb[0].mxu0 %v20_v47 }
  0xf6   :  { %v110_v52 = vpop.f32.mrb[0].mxu0 }
  0xf7   :  { %v111_v53 = vadd.f32 %v229_v51, %v110_v52  ;;  %v299_v54 = vpop.f32.mrb[1].mxu0 }
  0xf9   :  { %v114_v55 = vmax.f32 %v111_v53, 0.0  ;;  %223 = vst [vmem:[%s554_s5] sm:$0xff] %v111_v53 }
  0xfb   :  { %333 = vmatmul.mubr.f32.vlgmr.msra.gmra.mrb[0].mxu1 %v114_v55 }
 0x1ce   :  { %v204_v57 = vpop.f32.mrb[0].mxu1 }
 0x1cf   :  { %v205_v58 = vadd.f32 %v230_v56, %v204_v57  ;;  %v334_v59 = vpop.f32.mrb[1].mxu1 }
 0x1d1   :  { %v209_v60 = vand.u32 2147483647, %v205_v58  ;;  %v208_v7 = vmax.f32 %v205_v58, 0.0 }
 0x1d3   :  { %v210_v61 = vsub.f32 0.0, %v209_v60 }
 0x1d5   :  { %v211_v62 = vmul.f32 1.442695, %v210_v61 }
 0x1d7   :  { %386 = vpow2.f32 %v211_v62 }
 0x1e1   :  { %v387_v63 = vpop.eup %386 }
 0x1e2   :  { %v213_v0 = vadd.f32 1.0, %v387_v63  ;;  %v216_v1 = vmul.f32 -0.5, %v387_v63  ;;  %v219_v3 = vand.u32 2147483647, %v387_v63 }
 0x1e4   :  { %388 = vlog2.f32 %v213_v0  ;;  %v217_v2 = vadd.f32 1.0, %v216_v1  ;;  %vm220_vm1 = vcmp.lt.f32.partialorder %v219_v3, 0.0004427343 }
 0x1e6   :  { %v218_v6 = vmul.f32 %v387_v63, %v217_v2 }
 0x1ee   :  { %v389_v4 = vpop.eup %388 }
 0x1ef   :  { %v215_v5 = vmul.f32 0.6931472, %v389_v4 }
 0x1f1   :  { %v221_v8 = vsel %vm220_vm1, %v218_v6, %v215_v5 }
 0x1f2   :  { %v222_v9 = vadd.f32 %v221_v8, %v208_v7 }
 0x1f4   :  { %224 = vst [vmem:[%s554_s5 + $0x8] sm:$0xff] %v222_v9 }

</bundles_post_ra>
